<compile_context>
chip_gen: v7x
topology: tpu7x:2x2x1
jax: 0.10.0
libtpu: 0.0.40
codegen_flags: <defaults>
</compile_context>

<pallas_src>
import functools
import math

import jax
import jax.numpy as jnp
from jax.experimental import pallas as pl
from jax.experimental.pallas import tpu as pltpu


def _lam_kernel(gamma_ref, xg_ref, xc_ref, p_ref, bm_ref, tm_ref, w_ref, b_ref,
                o_ref, *, n, c, h, w):
    """Fused layer-attention + 3x3 conv for one batch element.

    gamma_ref : (1,)            f32 SMEM scalar
    xg_ref    : (1, N, C*H*W)   f32 -- group view of the input
    xc_ref    : (1, N*C, H*W)   f32 -- conv view of the same input bytes
    p_ref     : (N*C, N)        f32 0/1, P[i, g] = (i // C == g)
    bm_ref    : (N*C, N*C)      f32 0/1, 1 iff (i % C == j % C)
    tm_ref    : (9, H*W)        f32 0/1 validity mask per 3x3 tap
    w_ref     : (C, 9*N*C)      bf16 conv weight, columns ordered tap-major
    b_ref     : (C, 1)          f32 conv bias
    o_ref     : (1, C, H*W)     f32 output
    """
    cin = n * c
    hw = h * w
    gamma = gamma_ref[0]

    # ---- 1) attention map over the N residual groups (bf16 MXU, f32 accum) ----
    xg = xg_ref[0]                                   # (N, C*H*W) f32
    xgb = xg.astype(jnp.bfloat16)
    scores = jax.lax.dot_general(                    # X @ X^T, contract last dims
        xgb, xgb, (((1,), (1,)), ((), ())),
        preferred_element_type=jnp.float32)          # (N, N)
    scores = scores - jnp.max(scores, axis=-1, keepdims=True)
    e = jnp.exp(scores)
    attn = e * pl.reciprocal(jnp.sum(e, axis=-1, keepdims=True), approx=True)

    # ---- 2) expand attn to a block-diagonal (N*C, N*C) operator --------------
    # big[i, j] = attn[i//C, j//C]; masking keeps only entries with i%C == j%C,
    # i.e. A = kron(attn, I_C).  This lets us apply the attention in the
    # (N*C, H*W) layout without any in-kernel reshape.
    P = p_ref[...]                                                   # (N*C, N)
    tmp = jax.lax.dot_general(attn, P, (((1,), (1,)), ((), ())),
                              preferred_element_type=jnp.float32)    # (N, N*C)
    big = jnp.dot(P, tmp, preferred_element_type=jnp.float32)        # (N*C, N*C)
    a_blk = big * bm_ref[...]

    xc = xc_ref[0]                                                   # (N*C, H*W) f32
    y = jnp.dot(a_blk.astype(jnp.bfloat16), xc.astype(jnp.bfloat16),
                preferred_element_type=jnp.float32)                  # (N*C, H*W)

    # ---- 3) gamma-scaled residual (kept in f32) -------------------------------
    feat = gamma * y + xc                                            # (N*C, H*W)

    # ---- 4) 3x3 conv, padding=1: in-VMEM im2col + one bf16 matmul -------------
    pad = w + 1
    zpad = jnp.zeros((cin, pad), jnp.float32)
    featp = jnp.concatenate([zpad, feat, zpad], axis=1)   # (N*C, H*W + 2*(W+1))
    tm = tm_ref[...]                                      # (9, H*W)
    taps = []
    t = 0
    for dy in (-1, 0, 1):
        for dx in (-1, 0, 1):
            start = pad + dy * w + dx                     # static lane offset
            taps.append(featp[:, start:start + hw] * tm[t:t + 1, :])
            t += 1
    patches = jnp.concatenate(taps, axis=0).astype(jnp.bfloat16)     # (9*N*C, H*W)

    out = jnp.dot(w_ref[...], patches,
                  preferred_element_type=jnp.float32)                # (C, H*W)
    o_ref[0] = out + b_ref[...]


def layer_attention_module(feature_group, gamma, conv_w, conv_b):
    """feature_group: (B, N, C, H, W) f32; conv_w: (C, N*C, 3, 3); conv_b: (C,)."""
    b, n, c, h, w = feature_group.shape
    chw, hw, cin = c * h * w, h * w, n * c
    k9 = 9 * cin

    # Two host-side views of the same bytes (row-major reshapes, no real copy).
    x_groups = feature_group.reshape(b, n, chw)
    x_conv = feature_group.reshape(b, cin, hw)

    # Tiny constant helper matrices (XLA constant-folds them under jit).
    gi = jnp.arange(cin, dtype=jnp.int32) // c
    oi = jnp.arange(cin, dtype=jnp.int32) % c
    P = (gi[:, None] == jnp.arange(n, dtype=jnp.int32)[None, :]).astype(jnp.float32)
    bmask = (oi[:, None] == oi[None, :]).astype(jnp.float32)

    pp = jnp.arange(hw, dtype=jnp.int32)
    xx, yy = pp % w, pp // w
    tmask = jnp.stack(
        [((xx + dx >= 0) & (xx + dx < w) & (yy + dy >= 0) & (yy + dy < h))
         for dy in (-1, 0, 1) for dx in (-1, 0, 1)]).astype(jnp.float32)  # (9, HW)

    # Conv weight in tap-major column order, stored bf16 (halves DMA, MXU-native).
    wmat = conv_w.transpose(0, 2, 3, 1).reshape(c, k9).astype(jnp.bfloat16)
    bias = conv_b.reshape(c, 1).astype(jnp.float32)
    gamma = gamma.reshape(1).astype(jnp.float32)

    kernel = functools.partial(_lam_kernel, n=n, c=c, h=h, w=w)
    out = pl.pallas_call(
        kernel,
        out_shape=jax.ShapeDtypeStruct((b, c, hw), jnp.float32),
        grid=(b,),
        in_specs=[
            pl.BlockSpec(memory_space=pltpu.MemorySpace.SMEM),       # gamma (1,)
            pl.BlockSpec((1, n, chw), lambda i: (i, 0, 0)),          # x, group view
            pl.BlockSpec((1, cin, hw), lambda i: (i, 0, 0)),         # x, conv view
            pl.BlockSpec((cin, n), lambda i: (0, 0)),                # P
            pl.BlockSpec((cin, cin), lambda i: (0, 0)),              # block mask
            pl.BlockSpec((9, hw), lambda i: (0, 0)),                 # tap masks
            pl.BlockSpec((c, k9), lambda i: (0, 0)),                 # conv weight
            pl.BlockSpec((c, 1), lambda i: (0, 0)),                  # conv bias
        ],
        out_specs=pl.BlockSpec((1, c, hw), lambda i: (i, 0, 0)),
        compiler_params=pltpu.CompilerParams(
            # "parallel" maps one batch element per TensorCore on v7x; on
            # single-TC v5e/v6e the 2-step grid loop overhead is negligible.
            dimension_semantics=("parallel",)
        ),
    )(gamma, x_groups, x_conv, P, bmask, tmask, wmat, bias)

    return out.reshape(b, c, h, w)


if __name__ == "__main__":
    # Small shapes consistent with the module: B=2, n_resgroups=8, n_feats=4, 16x16
    b, n, c, h, w = 2, 8, 4, 16, 16
    key = jax.random.PRNGKey(0)
    k1, k2, k3 = jax.random.split(key, 3)

    # Scaled-down activations keep the (X X^T) softmax numerically tame.
    x = 0.05 * jax.random.normal(k1, (b, n, c, h, w), dtype=jnp.float32)

    # Deterministic parameter init (Conv2d default-style uniform bounds).
    fan_in = n * c * 3 * 3
    bound = 1.0 / math.sqrt(fan_in)
    conv_w = jax.random.uniform(k2, (c, n * c, 3, 3), jnp.float32, -bound, bound)
    conv_b = jax.random.uniform(k3, (c,), jnp.float32, -bound, bound)
    # gamma is a learnable scalar (initial_gamma=0 by default); use a nonzero
    # deterministic value so the attention branch contributes to the output.
    gamma = jnp.array([0.5], dtype=jnp.float32)

    fwd = jax.jit(layer_attention_module)
    out = jax.block_until_ready(fwd(x, gamma, conv_w, conv_b))
    assert out.shape == (b, c, h, w)

    # Pure-JAX f32 reference for a sanity check.
    xr = x.reshape(b, n, c * h * w)
    scores = jnp.einsum("bnk,bmk->bnm", xr, xr)
    attn = jax.nn.softmax(scores, axis=2)
    y = jnp.einsum("bnm,bmk->bnk", attn, xr).reshape(b, n, c, h, w)
    feat = (gamma[0] * y + x).reshape(b, n * c, h, w)
    ref = jax.lax.conv_general_dilated(
        feat, conv_w, window_strides=(1, 1), padding=((1, 1), (1, 1)),
        dimension_numbers=("NCHW", "OIHW", "NCHW"),
    ) + conv_b.reshape(1, c, 1, 1)

    if not jnp.allclose(out, ref, rtol=5e-2, atol=5e-3):
        raise AssertionError(
            "mismatch vs reference, max abs diff = "
            f"{float(jnp.max(jnp.abs(out - ref)))}"
        )
    print("KERNEL_OK")
</pallas_src>

<mosaic_0001>
module attributes {stable_mosaic.version = 11 : i64} {
  func.func @_lam_kernel(%arg0: i32, %arg1: memref<1xf32, #tpu.memory_space<smem>>, %arg2: memref<1x8x1024xf32, #tpu.memory_space<vmem>>, %arg3: memref<1x32x256xf32, #tpu.memory_space<vmem>>, %arg4: memref<32x8xf32, #tpu.memory_space<vmem>>, %arg5: memref<32x32xf32, #tpu.memory_space<vmem>>, %arg6: memref<9x256xf32, #tpu.memory_space<vmem>>, %arg7: memref<4x288xbf16, #tpu.memory_space<vmem>>, %arg8: memref<4x1xf32, #tpu.memory_space<vmem>>, %arg9: memref<1x4x256xf32, #tpu.memory_space<vmem>>) attributes {dimension_semantics = [#tpu.dimension_semantics<parallel>], iteration_bounds = array<i64: 2>, scalar_prefetch = 0 : i64, scratch_operands = 0 : i64, tpu.core_type = #tpu.core_type<tc>, window_params = [{transform_indices = @transform_0, window_bounds = array<i64: 1>}, {transform_indices = @transform_1, window_bounds = array<i64: 1, 8, 1024>}, {transform_indices = @transform_2, window_bounds = array<i64: 1, 32, 256>}, {pipeline_mode = #tpu.pipeline_mode<synchronous>, transform_indices = @transform_3, window_bounds = array<i64: 32, 8>}, {pipeline_mode = #tpu.pipeline_mode<synchronous>, transform_indices = @transform_4, window_bounds = array<i64: 32, 32>}, {pipeline_mode = #tpu.pipeline_mode<synchronous>, transform_indices = @transform_5, window_bounds = array<i64: 9, 256>}, {pipeline_mode = #tpu.pipeline_mode<synchronous>, transform_indices = @transform_6, window_bounds = array<i64: 4, 288>}, {pipeline_mode = #tpu.pipeline_mode<synchronous>, transform_indices = @transform_7, window_bounds = array<i64: 4, 1>}, {transform_indices = @transform_8, window_bounds = array<i64: 1, 4, 256>}]} {
    %c0 = arith.constant 0 : index
    %0 = memref.load %arg1[%c0] : memref<1xf32, #tpu.memory_space<smem>>
    %c0_0 = arith.constant 0 : index
    %c0_1 = arith.constant 0 : index
    %c0_2 = arith.constant 0 : index
    %1 = vector.load %arg2[%c0_0, %c0_1, %c0_2] : memref<1x8x1024xf32, #tpu.memory_space<vmem>>, vector<1x8x1024xf32>
    %2 = vector.shape_cast %1 : vector<1x8x1024xf32> to vector<8x1024xf32>
    %3 = arith.truncf %2 : vector<8x1024xf32> to vector<8x1024xbf16>
    %cst = arith.constant dense<0.000000e+00> : vector<8x8xf32>
    %4 = tpu.matmul %3, %3, %cst {dimension_numbers = #tpu.dot_dimension_numbers<[1], [1], [0], [0], [0, 0, 1, 0], [], []>} : vector<8x1024xbf16>, vector<8x1024xbf16>, vector<8x8xf32> -> vector<8x8xf32>
    %cst_3 = arith.constant dense<0xFF800000> : vector<8xf32>
    %5 = vector.multi_reduction <maximumf>, %4, %cst_3 [1] : vector<8x8xf32> to vector<8xf32>
    %6 = vector.shape_cast %5 : vector<8xf32> to vector<8x1xf32>
    %7 = vector.broadcast %6 : vector<8x1xf32> to vector<8x8xf32>
    %8 = arith.subf %4, %7 : vector<8x8xf32>
    %9 = math.exp %8 : vector<8x8xf32>
    %cst_4 = arith.constant dense<0.000000e+00> : vector<8xf32>
    %10 = vector.multi_reduction <add>, %9, %cst_4 [1] : vector<8x8xf32> to vector<8xf32>
    %11 = vector.shape_cast %10 : vector<8xf32> to vector<8x1xf32>
    %12 = tpu.reciprocal %11 {approx = true} : vector<8x1xf32> -> vector<8x1xf32>
    %13 = vector.broadcast %12 : vector<8x1xf32> to vector<8x8xf32>
    %14 = arith.mulf %9, %13 : vector<8x8xf32>
    %c0_5 = arith.constant 0 : index
    %c0_6 = arith.constant 0 : index
    %15 = vector.load %arg4[%c0_5, %c0_6] : memref<32x8xf32, #tpu.memory_space<vmem>>, vector<32x8xf32>
    %cst_7 = arith.constant dense<0.000000e+00> : vector<8x32xf32>
    %16 = tpu.matmul %14, %15, %cst_7 {dimension_numbers = #tpu.dot_dimension_numbers<[1], [1], [0], [0], [0, 0, 1, 0], [], []>} : vector<8x8xf32>, vector<32x8xf32>, vector<8x32xf32> -> vector<8x32xf32>
    %cst_8 = arith.constant dense<0.000000e+00> : vector<32x32xf32>
    %17 = tpu.matmul %15, %16, %cst_8 {dimension_numbers = #tpu.dot_dimension_numbers<[1], [0], [0], [1], [0, 0, 1, 1], [], []>} : vector<32x8xf32>, vector<8x32xf32>, vector<32x32xf32> -> vector<32x32xf32>
    %c0_9 = arith.constant 0 : index
    %c0_10 = arith.constant 0 : index
    %18 = vector.load %arg5[%c0_9, %c0_10] : memref<32x32xf32, #tpu.memory_space<vmem>>, vector<32x32xf32>
    %19 = arith.mulf %17, %18 : vector<32x32xf32>
    %c0_11 = arith.constant 0 : index
    %c0_12 = arith.constant 0 : index
    %c0_13 = arith.constant 0 : index
    %20 = vector.load %arg3[%c0_11, %c0_12, %c0_13] : memref<1x32x256xf32, #tpu.memory_space<vmem>>, vector<1x32x256xf32>
    %21 = vector.shape_cast %20 : vector<1x32x256xf32> to vector<32x256xf32>
    %22 = arith.truncf %19 : vector<32x32xf32> to vector<32x32xbf16>
    %23 = arith.truncf %21 : vector<32x256xf32> to vector<32x256xbf16>
    %cst_14 = arith.constant dense<0.000000e+00> : vector<32x256xf32>
    %24 = tpu.matmul %22, %23, %cst_14 {dimension_numbers = #tpu.dot_dimension_numbers<[1], [0], [0], [1], [0, 0, 1, 1], [], []>} : vector<32x32xbf16>, vector<32x256xbf16>, vector<32x256xf32> -> vector<32x256xf32>
    %25 = vector.broadcast %0 : f32 to vector<32x256xf32>
    %26 = arith.mulf %25, %24 : vector<32x256xf32>
    %27 = arith.addf %26, %21 : vector<32x256xf32>
    %cst_15 = arith.constant 0.000000e+00 : f32
    %28 = vector.broadcast %cst_15 : f32 to vector<32x17xf32>
    %29 = tpu.concatenate %28, %27, %28 in 1 : vector<32x17xf32>, vector<32x256xf32>, vector<32x17xf32> -> vector<32x290xf32>
    %c0_16 = arith.constant 0 : index
    %c0_17 = arith.constant 0 : index
    %30 = vector.load %arg6[%c0_16, %c0_17] : memref<9x256xf32, #tpu.memory_space<vmem>>, vector<9x256xf32>
    %31 = vector.extract_strided_slice %29 {offsets = [0, 0], sizes = [32, 256], strides = [1, 1]} : vector<32x290xf32> to vector<32x256xf32>
    %32 = vector.extract_strided_slice %30 {offsets = [0, 0], sizes = [1, 256], strides = [1, 1]} : vector<9x256xf32> to vector<1x256xf32>
    %33 = vector.broadcast %32 : vector<1x256xf32> to vector<32x256xf32>
    %34 = arith.mulf %31, %33 : vector<32x256xf32>
    %35 = vector.extract_strided_slice %29 {offsets = [0, 1], sizes = [32, 256], strides = [1, 1]} : vector<32x290xf32> to vector<32x256xf32>
    %36 = vector.extract_strided_slice %30 {offsets = [1, 0], sizes = [1, 256], strides = [1, 1]} : vector<9x256xf32> to vector<1x256xf32>
    %37 = vector.broadcast %36 : vector<1x256xf32> to vector<32x256xf32>
    %38 = arith.mulf %35, %37 : vector<32x256xf32>
    %39 = vector.extract_strided_slice %29 {offsets = [0, 2], sizes = [32, 256], strides = [1, 1]} : vector<32x290xf32> to vector<32x256xf32>
    %40 = vector.extract_strided_slice %30 {offsets = [2, 0], sizes = [1, 256], strides = [1, 1]} : vector<9x256xf32> to vector<1x256xf32>
    %41 = vector.broadcast %40 : vector<1x256xf32> to vector<32x256xf32>
    %42 = arith.mulf %39, %41 : vector<32x256xf32>
    %43 = vector.extract_strided_slice %29 {offsets = [0, 16], sizes = [32, 256], strides = [1, 1]} : vector<32x290xf32> to vector<32x256xf32>
    %44 = vector.extract_strided_slice %30 {offsets = [3, 0], sizes = [1, 256], strides = [1, 1]} : vector<9x256xf32> to vector<1x256xf32>
    %45 = vector.broadcast %44 : vector<1x256xf32> to vector<32x256xf32>
    %46 = arith.mulf %43, %45 : vector<32x256xf32>
    %47 = vector.extract_strided_slice %29 {offsets = [0, 17], sizes = [32, 256], strides = [1, 1]} : vector<32x290xf32> to vector<32x256xf32>
    %48 = vector.extract_strided_slice %30 {offsets = [4, 0], sizes = [1, 256], strides = [1, 1]} : vector<9x256xf32> to vector<1x256xf32>
    %49 = vector.broadcast %48 : vector<1x256xf32> to vector<32x256xf32>
    %50 = arith.mulf %47, %49 : vector<32x256xf32>
    %51 = vector.extract_strided_slice %29 {offsets = [0, 18], sizes = [32, 256], strides = [1, 1]} : vector<32x290xf32> to vector<32x256xf32>
    %52 = vector.extract_strided_slice %30 {offsets = [5, 0], sizes = [1, 256], strides = [1, 1]} : vector<9x256xf32> to vector<1x256xf32>
    %53 = vector.broadcast %52 : vector<1x256xf32> to vector<32x256xf32>
    %54 = arith.mulf %51, %53 : vector<32x256xf32>
    %55 = vector.extract_strided_slice %29 {offsets = [0, 32], sizes = [32, 256], strides = [1, 1]} : vector<32x290xf32> to vector<32x256xf32>
    %56 = vector.extract_strided_slice %30 {offsets = [6, 0], sizes = [1, 256], strides = [1, 1]} : vector<9x256xf32> to vector<1x256xf32>
    %57 = vector.broadcast %56 : vector<1x256xf32> to vector<32x256xf32>
    %58 = arith.mulf %55, %57 : vector<32x256xf32>
    %59 = vector.extract_strided_slice %29 {offsets = [0, 33], sizes = [32, 256], strides = [1, 1]} : vector<32x290xf32> to vector<32x256xf32>
    %60 = vector.extract_strided_slice %30 {offsets = [7, 0], sizes = [1, 256], strides = [1, 1]} : vector<9x256xf32> to vector<1x256xf32>
    %61 = vector.broadcast %60 : vector<1x256xf32> to vector<32x256xf32>
    %62 = arith.mulf %59, %61 : vector<32x256xf32>
    %63 = vector.extract_strided_slice %29 {offsets = [0, 34], sizes = [32, 256], strides = [1, 1]} : vector<32x290xf32> to vector<32x256xf32>
    %64 = vector.extract_strided_slice %30 {offsets = [8, 0], sizes = [1, 256], strides = [1, 1]} : vector<9x256xf32> to vector<1x256xf32>
    %65 = vector.broadcast %64 : vector<1x256xf32> to vector<32x256xf32>
    %66 = arith.mulf %63, %65 : vector<32x256xf32>
    %67 = tpu.concatenate %34, %38, %42, %46, %50, %54, %58, %62, %66 in 0 : vector<32x256xf32>, vector<32x256xf32>, vector<32x256xf32>, vector<32x256xf32>, vector<32x256xf32>, vector<32x256xf32>, vector<32x256xf32>, vector<32x256xf32>, vector<32x256xf32> -> vector<288x256xf32>
    %68 = arith.truncf %67 : vector<288x256xf32> to vector<288x256xbf16>
    %c0_18 = arith.constant 0 : index
    %c0_19 = arith.constant 0 : index
    %69 = vector.load %arg7[%c0_18, %c0_19] : memref<4x288xbf16, #tpu.memory_space<vmem>>, vector<4x288xbf16>
    %cst_20 = arith.constant dense<0.000000e+00> : vector<4x256xf32>
    %70 = tpu.matmul %69, %68, %cst_20 {dimension_numbers = #tpu.dot_dimension_numbers<[1], [0], [0], [1], [0, 0, 1, 1], [], []>} : vector<4x288xbf16>, vector<288x256xbf16>, vector<4x256xf32> -> vector<4x256xf32>
    %c0_21 = arith.constant 0 : index
    %c0_22 = arith.constant 0 : index
    %71 = vector.load %arg8[%c0_21, %c0_22] : memref<4x1xf32, #tpu.memory_space<vmem>>, vector<4x1xf32>
    %72 = vector.broadcast %71 : vector<4x1xf32> to vector<4x256xf32>
    %73 = arith.addf %70, %72 : vector<4x256xf32>
    %c0_23 = arith.constant 0 : index
    %c0_24 = arith.constant 0 : index
    %c0_25 = arith.constant 0 : index
    %74 = vector.load %arg9[%c0_23, %c0_24, %c0_25] : memref<1x4x256xf32, #tpu.memory_space<vmem>>, vector<1x4x256xf32>
    %75 = vector.shape_cast %74 : vector<1x4x256xf32> to vector<4x256xf32>
    %76 = vector.shape_cast %73 : vector<4x256xf32> to vector<1x4x256xf32>
    tpu.vector_store %arg9[%c0_23, %c0_24, %c0_25], %76 {strides = array<i32>} : memref<1x4x256xf32, #tpu.memory_space<vmem>>, vector<1x4x256xf32>,
    return
  }
  func.func @transform_0(%arg0: i32) -> i32 {
    %c0_i32 = arith.constant 0 : i32
    %c0_i32_0 = arith.constant 0 : i32
    return %c0_i32 : i32
  }
  func.func @transform_1(%arg0: i32) -> (i32, i32, i32) {
    %c0_i32 = arith.constant 0 : i32
    %c0_i32_0 = arith.constant 0 : i32
    %c0_i32_1 = arith.constant 0 : i32
    return %arg0, %c0_i32, %c0_i32_0 : i32, i32, i32
  }
  func.func @transform_2(%arg0: i32) -> (i32, i32, i32) {
    %c0_i32 = arith.constant 0 : i32
    %c0_i32_0 = arith.constant 0 : i32
    %c0_i32_1 = arith.constant 0 : i32
    return %arg0, %c0_i32, %c0_i32_0 : i32, i32, i32
  }
  func.func @transform_3(%arg0: i32) -> (i32, i32) {
    %c0_i32 = arith.constant 0 : i32
    %c0_i32_0 = arith.constant 0 : i32
    %c0_i32_1 = arith.constant 0 : i32
    return %c0_i32, %c0_i32_0 : i32, i32
  }
  func.func @transform_4(%arg0: i32) -> (i32, i32) {
    %c0_i32 = arith.constant 0 : i32
    %c0_i32_0 = arith.constant 0 : i32
    %c0_i32_1 = arith.constant 0 : i32
    return %c0_i32, %c0_i32_0 : i32, i32
  }
  func.func @transform_5(%arg0: i32) -> (i32, i32) {
    %c0_i32 = arith.constant 0 : i32
    %c0_i32_0 = arith.constant 0 : i32
    %c0_i32_1 = arith.constant 0 : i32
    return %c0_i32, %c0_i32_0 : i32, i32
  }
  func.func @transform_6(%arg0: i32) -> (i32, i32) {
    %c0_i32 = arith.constant 0 : i32
    %c0_i32_0 = arith.constant 0 : i32
    %c0_i32_1 = arith.constant 0 : i32
    return %c0_i32, %c0_i32_0 : i32, i32
  }
  func.func @transform_7(%arg0: i32) -> (i32, i32) {
    %c0_i32 = arith.constant 0 : i32
    %c0_i32_0 = arith.constant 0 : i32
    %c0_i32_1 = arith.constant 0 : i32
    return %c0_i32, %c0_i32_0 : i32, i32
  }
  func.func @transform_8(%arg0: i32) -> (i32, i32, i32) {
    %c0_i32 = arith.constant 0 : i32
    %c0_i32_0 = arith.constant 0 : i32
    %c0_i32_1 = arith.constant 0 : i32
    return %arg0, %c0_i32, %c0_i32_0 : i32, i32, i32
  }
}

</mosaic_0001>

<bundles_post_ra>
// kernel: layer_attention_module.1
= control target key start
LH: loop header
LB: loop body
LE: loop exit
PB: predicated region body
PF: predicated region fallthrough
CT: control target
= control target key end

     0   :  { %s2186_s29 = smov 0   ;;  %s2907_s0 = inlined_call_operand.<no memory space> [shape: f32[1], index: 0, kind: input, shape index: {}]   ;;  %s2908_s1 = inlined_call_operand.vmem [shape: f32[2,8,1024], index: 1, kind: input, shape index: {}]   ;;  %s2909_s2 = inlined_call_operand.vmem [shape: f32[2,32,256], index: 2, kind: input, shape index: {}]   ;;  %s2910_s3 = inlined_call_operand.vmem [shape: f32[32,8], index: 3, kind: input, shape index: {}]   ;;  %s2911_s4 = inlined_call_operand.vmem [shape: f32[32,32], index: 4, kind: input, shape index: {}]   ;;  %s2912_s5 = inlined_call_operand.vmem [shape: f32[9,256], index: 5, kind: input, shape index: {}]   ;;  %s2913_s6 = inlined_call_operand.vmem [shape: bf16[4,288], index: 6, kind: input, shape index: {}]   ;;  %s2914_s7 = inlined_call_operand.vmem [shape: f32[4,1], index: 7, kind: input, shape index: {}]   ;;  %s2915_s8 = inlined_call_operand.vmem [shape: f32[2,4,256], index: 8, kind: output, shape index: {}]  }
   0x1   :  { %13 = sst [smem:[#allocation2]] %s2907_s0 }
   0x2 LB: > { %s1748_s30 = sadd.s32 4294967295, %s2115_s29   ;;  %p1752_p0 = scmp.ge.s32.totalorder %s2115_s29, 1  ;;  %s2115_s29 = sphi %s2186_s29, %s19_s29  }
   0x3   : > { %p273_p1 = scmp.lt.s32.totalorder %s2115_s29, 3 }
   0x5   : > { %p274_p2 = pnand %p1752_p0, %p273_p1 }
   0x7   : > { %277 = sbr.rel (%p274_p2) target bundleno = 1813 (0x715), region = 52 }
   0xe   : > { %p312_p3 = scmp.lt.s32.totalorder %s1748_s30, 1  ;;  %vm505_vm0 = vcmask 64512   ;;  %v517_v21 = vld [vmem:[%s2910_s3] sm:$0xff]  ;;  %v518_v22 = vld [vmem:[%s2910_s3 + $0x8] sm:$0xff]  ;;  %v2117_v24 = vmov 0.0|0.0   ;;  %v519_v31 = vld [vmem:[%s2910_s3 + $0x10] sm:$0xff]  ;;  %v843_v53 = vlaneseq }
   0xf   : > { %vm2211_vm1 = vmpackc.low %vm505_vm0, %vm505_vm0  ;;  %v1808_v25 = vpack.c.bf16 %v518_v22, %v517_v21  ;;  %v520_v32 = vld [vmem:[%s2910_s3 + $0x18] sm:$0xff]  ;;  %vm2118_vm2 = vmmov 0   ;;  %v2119_v34 = vmov 0.0   ;;  %v2916_v52 = vmov 0   ;;  %v2259_v55 = vld [vmem:[%s2912_s5] sm:$0xff]  ;;  %s2121_s27 = smov 1  }
  0x10   : > { %s2943_s30 = smov (!%p312_p3, %s1748_s30), 1  ;;  %v1812_v33 = vpack.c.bf16 %v520_v32, %v519_v31  ;;  %2102 = vset.pattern.permute.xlu1 %v2916_v52  ;;  %2103 = vset.pattern.permute.xlu0 %v2916_v52  ;;  %v2254_v54 = vshrl.u32 %v843_v53, 7  ;;  %v2265_v57 = vld [vmem:[%s2912_s5 + $0x8] sm:$0xff]  ;;  %v691_v61 = vld [vmem:[%s2911_s4] sm:$0xff]  ;;  %vm713_vm3 = vcmask 261120   ;;  %s328_s15 = sld [smem:[#allocation2]] }
  0x11   : > { %s1775_s0 = sshll.u32 %s2943_s30, 6  ;;  %v692_v60 = vld [vmem:[%s2911_s4 + $0x8] sm:$0xff]  ;;  %s2122_s16 = smov 17   ;;  %vm873_vm4 = vcmask 7168   ;;  %vm814_vm5 = vcmask 138240   ;;  %vm904_vm6 = vcmask 15360  }
  0x12   : > { %s316_s11 = scalar_lea.vmem %s2908_s1, %s1775_s0  ;;  %s321_s22 = scalar_lea.vmem %s2909_s2, %s1775_s0  ;;  %v861_v56 = vsub.s32 1, %v2254_v54  ;;  %vm935_vm7 = vcmask 130048   ;;  %vm996_vm8 = vcmask 146432   ;;  %vm1057_vm9 = vcmask 269312  }
  0x13   : > { %v330_v0 = vld [vmem:[%s316_s11 + $0x8] sm:$0xff]  ;;  %v329_v1 = vld [vmem:[%s316_s11] sm:$0xff]  ;;  %v332_v2 = vld [vmem:[%s316_s11 + $0x18] sm:$0xff]  ;;  %s2123_s17 = smov 2   ;;  %s2124_s18 = smov 16   ;;  %vm1088_vm10 = vcmask 277504  }
  0x14   : > { %v338_v3 = vpack.c.bf16 %v330_v0, %v330_v0  ;;  %v337_v4 = vpack.c.bf16 %v329_v1, %v329_v1  ;;  %v340_v5 = vpack.c.bf16 %v332_v2, %v332_v2  ;;  %v331_v6 = vld [vmem:[%s316_s11 + $0x10] sm:$0xff]  ;;  %v334_v7 = vld [vmem:[%s316_s11 + $0x28] sm:$0xff]  ;;  %v333_v10 = vld [vmem:[%s316_s11 + $0x20] sm:$0xff]  ;;  %v862_v58 = vrot.slane %v2259_v55, %v861_v56  ;;  %s2125_s19 = smov 18   ;;  %s2126_s20 = smov 32  }
  0x15   : > { %v339_v8 = vpack.c.bf16 %v331_v6, %v331_v6  ;;  %v342_v9 = vpack.c.bf16 %v334_v7, %v334_v7  ;;  %v336_v11 = vld [vmem:[%s316_s11 + $0x38] sm:$0xff]  ;;  %v341_v12 = vpack.c.bf16 %v333_v10, %v333_v10  ;;  %v335_v14 = vld [vmem:[%s316_s11 + $0x30] sm:$0xff]  ;;  %v2233_v38 = vld [vmem:[%s321_s22 + $0x8] sm:$0xff]  ;;  %v866_v59 = vrot.slane %v2265_v57, %v861_v56  ;;  %s2127_s21 = smov 33   ;;  %s2128_s24 = smov 34  }
  0x16   : > { %345 = vmatprep.subr.bf16.mxu0 %v338_v3  ;;  %377 = vmatprep.mubr.bf16.mxu0 %v338_v3  ;;  %v344_v13 = vpack.c.bf16 %v336_v11, %v336_v11  ;;  %v343_v15 = vpack.c.bf16 %v335_v14, %v335_v14  ;;  %v2235_v39 = vld [vmem:[%s321_s22 + $0x18] sm:$0xff]  ;;  %v699_v40 = vld [vmem:[%s321_s22] sm:$0xff]  ;;  %v701_v41 = vld [vmem:[%s321_s22 + $0x10] sm:$0xff]  ;;  %v773_v10 = vstv %s328_s15  ;;  %s2130_s28 = smov 126   ;;  %s2131_s0 = smov 112   ;;  %vm1141_vm11 = vcmask 1039360  }
  0x17   : > { %346 = vmatpush1.bf16.xpose.msra.mxu0 %v337_v4  ;;  %v710_v42 = vpack.c.bf16 %v2235_v39, %v2233_v38  ;;  %v709_v44 = vpack.c.bf16 %v701_v41, %v699_v40  ;;  %v2242_v46 = vld [vmem:[%s321_s22 + $0x28] sm:$0xff]  ;;  %v2244_v47 = vld [vmem:[%s321_s22 + $0x38] sm:$0xff]  ;;  %v703_v49 = vld [vmem:[%s321_s22 + $0x20] sm:$0xff]  ;;  %869 = vrot.lane.b32.xlu1 %v862_v58, %s2121_s27  ;;  %s2132_s9 = smov 111   ;;  %s2133_s10 = smov 110   ;;  %vm1194_vm12 = vcmask 1031168  }
  0x18   : > { %385 = vmatprep.subr.bf16.mxu0 %v340_v5  ;;  %v712_v48 = vpack.c.bf16 %v2244_v47, %v2242_v46  ;;  %v2248_v50 = vld [vmem:[%s321_s22 + $0x30] sm:$0xff]  ;;  %v694_v2 = vld [vmem:[%s2911_s4 + $0x18] sm:$0xff]  ;;  %s2134_s11 = smov 96   ;;  %s2135_s12 = smov 95   ;;  %vm1247_vm13 = vcmask 916480   ;;  %vm1300_vm14 = vcmask 908288  }
  0x19   : > { %v711_v51 = vpack.c.bf16 %v2248_v50, %v703_v49  ;;  %v693_v3 = vld [vmem:[%s2911_s4 + $0x10] sm:$0xff]  ;;  %s2137_s15 = smov 94   ;;  %vm1353_vm15 = vcmask 900096  }
  0x1a   : > { %v1770_v58 = vld [vmem:[%s2912_s5 + $0x10] ss:$0 sm:$0xff] }
  0x1b   : > { %871 = vrot.lane.b32.xlu1 %v866_v59, %s2121_s27  ;;  %s2129_s27 = smov 127  }
  0x1e   : > { %378 = vmatmul.mubr.bf16.vlgmr.msra.gmra.mrb[0].mxu0 %v337_v4 }
  0x1f   : > { %386 = vmatpush1.bf16.xpose.msra.mxu0 %v339_v8  ;;  %417 = vmatprep.mubr.bf16.mxu0 %v340_v5 }
  0x20   : > { %425 = vmatprep.subr.bf16.mxu0 %v342_v9 }
  0x2a   : > { %418 = vmatmul.mubr.bf16.vlgmr.msra.gmra.mrb[0].mxu0 %v339_v8 }
  0x2b   : > { %426 = vmatpush1.bf16.xpose.msra.mxu0 %v341_v12  ;;  %457 = vmatprep.mubr.bf16.mxu0 %v342_v9 }
  0x2c   : > { %465 = vmatprep.subr.bf16.mxu0 %v344_v13 }
  0x36   : > { %458 = vmatmul.mubr.bf16.vlgmr.msra.gmra.mrb[0].mxu0 %v341_v12 }
  0x37   : > { %466 = vmatpush1.bf16.xpose.msra.mxu0 %v343_v15  ;;  %497 = vmatprep.mubr.bf16.mxu0 %v344_v13 }
  0x38   : > { %1807 = vmatprep.subr.bf16.mxu0 %v2117_v24 }
  0x42   : > { %498 = vmatmul.mubr.bf16.vlgmr.msra.gmra.mrb[0].mxu0 %v343_v15 }
  0x43   : > { %1810 = vmatpush3.bf16.xpose.msk.msra.mxu0 %vm2211_vm1, %v1808_v25  ;;  %1796 = vmatprep.mubr.msk.f32.mxu0 %vm2118_vm2, %v2119_v34  ;;  %v923_v34 = vsub.s32 3, %v2254_v54  ;;  %vm1512_vm2 = vcmask 769024  }
  0x44   : > { %1811 = vmatprep.subr.bf16.mxu0 %v2117_v24 }
  0x4b   : > { %1814 = vmatpush3.bf16.xpose.msk.msra.mxu0 %vm2211_vm1, %v1812_v33  ;;  %vm1459_vm1 = vcmask 777216  }
  0x89   : > { %v2323_v59 = vpop.permute.xlu1 %869 }
 0x115   : > { %v499_v16 = vpop.f32.mrb[0].mxu0 }
 0x116   : > { %v501_v17 = vpop.f32.mrb[1].mxu0  ;;  %v506_v18 = vsel %vm505_vm0, %v499_v16, -inf }
 0x117   : > { %507 = vmax.xlane.f32.xlu0 %v506_v18  ;;  %v502_v19 = vpop.f32.mrb[2].mxu0 }
 0x118   : > { %v503_v20 = vpop.f32.mrb[3].mxu0 }
 0x1a4   : > { %v508_v26 = vpop.xlane.xlu0 %507 }
 0x1a5   : > { %v509_v27 = vsub.f32 %v499_v16, %v508_v26 }
 0x1a7   : > { %v510_v28 = vmul.f32 1.442695, %v509_v27 }
 0x1a9   : > { %2105 = vpow2.f32 %v510_v28 }
 0x1b3   : > { %v2106_v29 = vpop.eup %2105 }
 0x1b4   : > { %v512_v30 = vsel %vm505_vm0, %v2106_v29, 0.0 }
 0x1b5   : > { %513 = vadd.xlane.f32.xlu0 %v512_v30 }
 0x242   : > { %v514_v35 = vpop.xlane.xlu0 %513 }
 0x243   : > { %2107 = vrcp.f32 %v514_v35 }
 0x24d   : > { %v2108_v36 = vpop.eup %2107 }
 0x24e   : > { %v516_v37 = vmul.f32 %v2108_v36, %v2106_v29  ;;  %v892_v29 = vsub.s32 2, %v2254_v54 }
 0x250   : > { %1797 = vmatmul.mubr.msk.f32.vlgmr.msra.gmra.mrb[4].mxu0 %vm505_vm0, %v516_v37  ;;  %v897_v33 = vrot.slane %v2265_v57, %v892_v29  ;;  %v928_v37 = vrot.slane %v2265_v57, %v923_v34 }
 0x251   : > { %1801 = vmatprep.mubr.msk.f32.mxu0 %vm505_vm0, %v517_v21 }
 0x323   : > { %v602_v43 = vpop.f32.mrb[4].mxu0 }
 0x324   : > { %v1798_v45 = vpop.f32.mrb[5].mxu0  ;;  %1799 = vmatprep.subr.mxu0 %v602_v43 }
 0x325   : > { %1800 = vmatpush3.msra.mxu0 %v602_v43  ;;  %v924_v45 = vrot.slane %v2259_v55, %v923_v34 }
 0x326   : > { %1802 = vmatmul.mubr.msk.f32.vlgmr.msra.gmra.mrb[6].mxu0 %vm505_vm0, %v518_v22  ;;  %720 = vmatprep.subr.bf16.mxu0 %v710_v42  ;;  %v893_v42 = vrot.slane %v2259_v55, %v892_v29 }
 0x327   : > { %1804 = vmatprep.mubr.msk.f32.mxu0 %vm505_vm0, %v519_v31  ;;  %721 = vmatpush1.bf16.msra.mxu0 %v709_v44  ;;  %v1015_v44 = vsub.s32 6, %v2254_v54 }
 0x328   : > { %722 = vmatprep.subr.bf16.mxu0 %v712_v48 }
 0x329   : > { %v1016_v53 = vrot.slane %v2259_v55, %v1015_v44 }
 0x32a   : > { %1805 = vmatmul.mubr.msk.f32.gmra.mrb[8].mxu0 %vm505_vm0, %v520_v32  ;;  %vm1406_vm0 = vcmask 785408  }
 0x32b   : > { %723 = vmatpush1.bf16.msra.mxu0 %v711_v51  ;;  %752 = vmatprep.mubr.bf16.mxu0 %v2916_v52  ;;  %v1771_v51 = vld [vmem:[%s2912_s5 + $0x18] ss:$0 sm:$0xff] }
 0x3f9   : > { %v1803_v62 = vpop.f32.mrb[6].mxu0 }
 0x3fa   : > { %v696_v63 = vmul.f32 %v1803_v62, %v692_v60  ;;  %v672_v0 = vpop.f32.mrb[7].mxu0  ;;  %v2325_v60 = vpop.permute.xlu1 %871 }
 0x3fb   : > { %v695_v1 = vmul.f32 %v691_v61, %v672_v0 }
 0x3fd   : > { %v707_v4 = vpack.c.bf16 %v696_v63, %v695_v1  ;;  %v1806_v5 = vpop.f32.mrb[8].mxu0  ;;  %v845_v63 = vsub.s32 0, %v2254_v54  ;;  %v2330_v1 = vsel %vm873_vm4, %v2323_v59, %v2325_v60 }
 0x3fe   : > { %v698_v6 = vmul.f32 %v1806_v5, %v694_v2  ;;  %v682_v7 = vpop.f32.mrb[9].mxu0 }
 0x3ff   : > { %1768 = vmatmul.mubr.msk.bf16.vlgmr.msra.gmra.mrb[12].mxu0 %vm713_vm3, %v707_v4  ;;  %v697_v8 = vmul.f32 %v693_v3, %v682_v7  ;;  %v850_v7 = vrot.slane %v2265_v57, %v845_v63 }
 0x400   : > { %762 = vmatprep.mubr.bf16.mxu0 %v2916_v52 }
 0x401   : > { %v708_v9 = vpack.c.bf16 %v698_v6, %v697_v8  ;;  %v846_v8 = vrot.slane %v2259_v55, %v845_v63 }
 0x407   : > { %1769 = vmatmul.mubr.msk.bf16.gmra.mrb[16].mxu0 %vm713_vm3, %v708_v9 }
 0x4d2   : > { %v754_v11 = vpop.f32.mrb[12].mxu0 }
 0x4d3   : > { %v774_v12 = vmul.f32 %v773_v10, %v754_v11  ;;  %v756_v13 = vpop.f32.mrb[13].mxu0 }
 0x4d4   : > { %v758_v14 = vpop.f32.mrb[14].mxu0  ;;  %v775_v16 = vmul.f32 %v773_v10, %v756_v13 }
 0x4d5   : > { %v782_v15 = vadd.f32 %v774_v12, %v699_v40  ;;  %v776_v17 = vmul.f32 %v773_v10, %v758_v14  ;;  %v760_v18 = vpop.f32.mrb[15].mxu0 }
 0x4d6   : > { %v783_v20 = vadd.f32 %v775_v16, %v2233_v38  ;;  %v777_v21 = vmul.f32 %v773_v10, %v760_v18  ;;  %v954_v38 = vsub.s32 4, %v2254_v54 }
 0x4d7   : > { %v784_v19 = vadd.f32 %v776_v17, %v701_v41  ;;  %798 = vrot.lane.b32.xlu1 %v782_v15, %s2122_s16  ;;  %v984_v41 = vsub.s32 5, %v2254_v54 }
 0x4d8   : > { %v785_v26 = vadd.f32 %v777_v21, %v2235_v39  ;;  %v959_v40 = vrot.slane %v2265_v57, %v954_v38  ;;  %v955_v48 = vrot.slane %v2259_v55, %v954_v38 }
 0x4d9   : > { %802 = vrot.lane.b32.xlu0 %v784_v19, %s2122_s16  ;;  %v989_v43 = vrot.slane %v2265_v57, %v984_v41 }
 0x4da   : > { %v764_v22 = vpop.f32.mrb[16].mxu0 }
 0x4db   : > { %v778_v23 = vmul.f32 %v773_v10, %v764_v22  ;;  %800 = vrot.lane.b32.xlu1 %v783_v20, %s2122_s16  ;;  %v766_v24 = vpop.f32.mrb[17].mxu0 }
 0x4dc   : > { %v768_v25 = vpop.f32.mrb[18].mxu0  ;;  %v779_v32 = vmul.f32 %v773_v10, %v766_v24 }
 0x4dd   : > { %v770_v27 = vpop.f32.mrb[19].mxu0  ;;  %v786_v30 = vadd.f32 %v778_v23, %v703_v49  ;;  %v780_v36 = vmul.f32 %v773_v10, %v768_v25 }
 0x4de   : > { %v781_v28 = vmul.f32 %v773_v10, %v770_v27  ;;  %v787_v35 = vadd.f32 %v779_v32, %v2242_v46  ;;  %v1020_v46 = vrot.slane %v2265_v57, %v1015_v44 }
 0x4df   : > { %804 = vrot.lane.b32.xlu1 %v785_v26, %s2122_s16  ;;  %v788_v39 = vadd.f32 %v780_v36, %v2248_v50  ;;  %v985_v50 = vrot.slane %v2259_v55, %v984_v41 }
 0x4e0   : > { %v789_v31 = vadd.f32 %v781_v28, %v2244_v47  ;;  %v1045_v47 = vsub.s32 7, %v2254_v54 }
 0x4e2   : > { %812 = vrot.lane.b32.xlu0 %v789_v31, %s2122_s16  ;;  %v1050_v49 = vrot.slane %v2265_v57, %v1045_v47  ;;  %v1046_v56 = vrot.slane %v2259_v55, %v1045_v47 }
 0x4e3   : > { %806 = vrot.lane.b32.xlu1 %v786_v30, %s2122_s16 }
 0x4e6   : > { %902 = vrot.lane.b32.xlu0 %v897_v33, %s2123_s17 }
 0x4e7   : > { %808 = vrot.lane.b32.xlu1 %v787_v35, %s2122_s16 }
 0x4ea   : > { %933 = vrot.lane.b32.xlu0 %v928_v37, %s2124_s18 }
 0x4eb   : > { %810 = vrot.lane.b32.xlu1 %v788_v39, %s2122_s16 }
 0x4ee   : > { %964 = vrot.lane.b32.xlu0 %v959_v40, %s2122_s16 }
 0x4ef   : > { %900 = vrot.lane.b32.xlu1 %v893_v42, %s2123_s17 }
 0x4f2   : > { %994 = vrot.lane.b32.xlu0 %v989_v43, %s2125_s19 }
 0x4f3   : > { %931 = vrot.lane.b32.xlu1 %v924_v45, %s2124_s18  ;;  %s1777_s18 = sshll.u32 %s2943_s30, 3 }
 0x4f6   : > { %1025 = vrot.lane.b32.xlu0 %v1020_v46, %s2126_s20 }
 0x4f7   : > { %962 = vrot.lane.b32.xlu1 %v955_v48, %s2122_s16 }
 0x4fa   : > { %1055 = vrot.lane.b32.xlu0 %v1050_v49, %s2127_s21 }
 0x4fb   : > { %992 = vrot.lane.b32.xlu1 %v985_v50, %s2125_s19 }
 0x4fe   : > { %1086 = vrot.lane.b32.xlu0 %v1771_v51, %s2128_s24 }
 0x4ff   : > { %1023 = vrot.lane.b32.xlu1 %v1016_v53, %s2126_s20 }
 0x503   : > { %1053 = vrot.lane.b32.xlu1 %v1046_v56, %s2127_s21  ;;  %s326_s21 = scalar_lea.vmem %s2915_s8, %s1777_s18 }
 0x507   : > { %1084 = vrot.lane.b32.xlu1 %v1770_v58, %s2128_s24 }
 0x549   : > { %v799_v61 = vpop.permute.xlu1 %798 }
 0x54a   : > { %v2348_v9 = vsel %vm814_vm5, 0.0, %v799_v61 }
 0x54b   : > { %v803_v62 = vpop.permute.xlu0 %802  ;;  %v851_v18 = vmul.f32 %v846_v8, %v2348_v9 }
 0x54c   : > { %v2339_v4 = vsel %vm814_vm5, 0.0, %v803_v62 }
 0x54d   : > { %v801_v0 = vpop.permute.xlu1 %800  ;;  %v853_v14 = vmul.f32 %v846_v8, %v2339_v4 }
 0x54e   : > { %v2333_v2 = vsel %vm814_vm5, %v799_v61, %v801_v0  ;;  %v2336_v3 = vsel %vm814_vm5, %v801_v0, 0.0 }
 0x54f   : > { %v879_v5 = vmul.f32 %v2330_v1, %v2333_v2  ;;  %v880_v6 = vmul.f32 %v2325_v60, %v2336_v3  ;;  %v852_v57 = vmul.f32 %v850_v7, %v2333_v2  ;;  %v1529_v22 = vpack.c.bf16 %v853_v14, %v851_v18 }
 0x550   : > { %v878_v18 = vmul.f32 %v2323_v59, %v2348_v9 }
 0x551   : > { %v805_v10 = vpop.permute.xlu1 %804  ;;  %v1862_v11 = vpack.i.bf16 %v880_v6, %v879_v5  ;;  %v881_v5 = vmul.f32 %v2323_v59, %v2339_v4 }
 0x552   : > { %v2351_v12 = vsel %vm814_vm5, %v803_v62, %v805_v10  ;;  %v2354_v13 = vsel %vm814_vm5, %v805_v10, 0.0 }
 0x553   : > { %1863 = vrot.lane.b32.xlu1 %v1862_v11, %s2129_s27  ;;  %v854_v55 = vmul.f32 %v850_v7, %v2351_v12  ;;  %v882_v15 = vmul.f32 %v2330_v1, %v2351_v12  ;;  %v883_v16 = vmul.f32 %v2325_v60, %v2354_v13 }
 0x554   : > { %v813_v17 = vpop.permute.xlu0 %812 }
 0x555   : > { %v807_v19 = vpop.permute.xlu1 %806  ;;  %v1530_v20 = vpack.c.bf16 %v854_v55, %v852_v57  ;;  %v1902_v21 = vpack.i.bf16 %v883_v16, %v882_v15  ;;  %v2447_v14 = vsel %vm814_vm5, %v813_v17, 0.0 }
 0x556   : > { %v2369_v25 = vsel %vm814_vm5, 0.0, %v807_v19 }
 0x557   : > { %1594 = vmatprep.subr.bf16.mxu1 %v1530_v20  ;;  %1903 = vrot.lane.b32.xlu0 %v1902_v21, %s2129_s27  ;;  %v855_v33 = vmul.f32 %v846_v8, %v2369_v25  ;;  %v2461_v21 = vmul.f32 %v2323_v59, %v2369_v25 }
 0x558   : > { %1595 = vmatpush1.bf16.msra.mxu1 %v1529_v22  ;;  %v2366_v23 = vpop.permute.xlu0 %902  ;;  %v2465_v22 = vmul.f32 %v2325_v60, %v2447_v14 }
 0x559   : > { %v809_v24 = vpop.permute.xlu1 %808  ;;  %v914_v41 = vmul.f32 %v2366_v23, %v2354_v13  ;;  %v911_v43 = vmul.f32 %v2366_v23, %v2336_v3 }
 0x55a   : > { %v2372_v26 = vsel %vm814_vm5, %v807_v19, %v809_v24  ;;  %v2421_v56 = vsel %vm814_vm5, %v809_v24, 0.0  ;;  %v1882_v19 = vpack.i.bf16 %v881_v5, %v878_v18 }
 0x55b   : > { %v856_v31 = vmul.f32 %v850_v7, %v2372_v26  ;;  %v885_v10 = vmul.f32 %v2330_v1, %v2372_v26  ;;  %v886_v11 = vmul.f32 %v2325_v60, %v2421_v56 }
 0x55c   : > { %v2374_v27 = vpop.permute.xlu0 %933 }
 0x55d   : > { %v811_v28 = vpop.permute.xlu1 %810  ;;  %v945_v48 = vmul.f32 %v2374_v27, %v2354_v13  ;;  %v942_v53 = vmul.f32 %v2374_v27, %v2336_v3  ;;  %v1922_v20 = vpack.i.bf16 %v886_v11, %v885_v10 }
 0x55e   : > { %v2377_v29 = vsel %vm814_vm5, %v811_v28, %v813_v17  ;;  %v2380_v30 = vsel %vm814_vm5, 0.0, %v811_v28  ;;  %v917_v17 = vmul.f32 %v2366_v23, %v2421_v56 }
 0x55f   : > { %v858_v32 = vmul.f32 %v850_v7, %v2377_v29  ;;  %v857_v34 = vmul.f32 %v846_v8, %v2380_v30 }
 0x560   : > { %v2386_v35 = vpop.permute.xlu0 %964 }
 0x561   : > { %v2388_v36 = vpop.permute.xlu1 %900  ;;  %v1532_v37 = vpack.c.bf16 %v858_v32, %v856_v31  ;;  %v1531_v38 = vpack.c.bf16 %v857_v34, %v855_v33  ;;  %v975_v0 = vmul.f32 %v2386_v35, %v2354_v13  ;;  %v972_v8 = vmul.f32 %v2386_v35, %v2336_v3 }
 0x562   : > { %v2392_v39 = vsel %vm904_vm6, %v2388_v36, %v2366_v23  ;;  %v909_v31 = vmul.f32 %v2388_v36, %v2348_v9  ;;  %v912_v32 = vmul.f32 %v2388_v36, %v2339_v4  ;;  %v948_v33 = vmul.f32 %v2374_v27, %v2421_v56 }
 0x563   : > { %1596 = vmatprep.subr.bf16.mxu1 %v1532_v37  ;;  %v913_v40 = vmul.f32 %v2392_v39, %v2351_v12  ;;  %v910_v42 = vmul.f32 %v2392_v39, %v2333_v2  ;;  %v916_v28 = vmul.f32 %v2392_v39, %v2372_v26 }
 0x564   : > { %1597 = vmatpush1.bf16.msra.mxu1 %v1531_v38  ;;  %v2410_v49 = vpop.permute.xlu0 %994  ;;  %v2485_v38 = vmul.f32 %v2323_v59, %v2380_v30  ;;  %v2505_v59 = vmul.f32 %v2330_v1, %v2377_v29  ;;  %v919_v1 = vmul.f32 %v2392_v39, %v2377_v29 }
 0x565   : > { %v2402_v44 = vpop.permute.xlu1 %931  ;;  %v1907_v45 = vpack.i.bf16 %v914_v41, %v913_v40  ;;  %v1867_v46 = vpack.i.bf16 %v911_v43, %v910_v42 }
 0x566   : > { %v2406_v47 = vsel %vm935_vm7, %v2402_v44, %v2374_v27  ;;  %v940_v60 = vmul.f32 %v2402_v44, %v2348_v9  ;;  %v943_v37 = vmul.f32 %v2402_v44, %v2339_v4 }
 0x567   : > { %1908 = vrot.lane.b32.xlu0 %v1907_v45, %s2130_s28  ;;  %1868 = vrot.lane.b32.xlu1 %v1867_v46, %s2130_s28  ;;  %v944_v50 = vmul.f32 %v2406_v47, %v2351_v12  ;;  %v941_v51 = vmul.f32 %v2406_v47, %v2333_v2 }
 0x568   : > { %v2449_v57 = vpop.permute.xlu0 %1025 }
 0x569   : > { %v2423_v58 = vpop.permute.xlu1 %962  ;;  %v1912_v61 = vpack.i.bf16 %v945_v48, %v944_v50  ;;  %v1872_v62 = vpack.i.bf16 %v942_v53, %v941_v51  ;;  %v2497_v42 = vmul.f32 %v2449_v57, %v2336_v3  ;;  %v2509_v45 = vmul.f32 %v2449_v57, %v2354_v13 }
 0x56a   : > { %v2428_v63 = vsel %vm814_vm5, %v2423_v58, %v2386_v35  ;;  %v1927_v51 = vpack.i.bf16 %v917_v17, %v916_v28  ;;  %v1887_v53 = vpack.i.bf16 %v912_v32, %v909_v31  ;;  %v973_v11 = vmul.f32 %v2423_v58, %v2339_v4 }
 0x56b   : > { %1913 = vrot.lane.b32.xlu0 %v1912_v61, %s2131_s0  ;;  %1873 = vrot.lane.b32.xlu1 %v1872_v62, %s2131_s0  ;;  %v974_v6 = vmul.f32 %v2428_v63, %v2351_v12  ;;  %v971_v7 = vmul.f32 %v2428_v63, %v2333_v2  ;;  %v947_v61 = vmul.f32 %v2406_v47, %v2372_v26 }
 0x56c   : > { %v2487_v40 = vpop.permute.xlu0 %1055 }
 0x56d   : > { %v2451_v55 = vpop.permute.xlu1 %992  ;;  %v1917_v15 = vpack.i.bf16 %v975_v0, %v974_v6  ;;  %v1877_v16 = vpack.i.bf16 %v972_v8, %v971_v7  ;;  %v1892_v0 = vpack.i.bf16 %v943_v37, %v940_v60  ;;  %v970_v7 = vmul.f32 %v2423_v58, %v2348_v9 }
 0x56e   : > { %v1932_v17 = vpack.i.bf16 %v948_v33, %v947_v61  ;;  %v2560_v31 = vmul.f32 %v2487_v40, %v2354_v13  ;;  %v978_v60 = vmul.f32 %v2386_v35, %v2421_v56  ;;  %v1942_v37 = vpack.i.bf16 %v2485_v38, %v2461_v21 }
 0x56f   : > { %1918 = vrot.lane.b32.xlu0 %v1917_v15, %s2132_s9  ;;  %1878 = vrot.lane.b32.xlu1 %v1877_v16, %s2132_s9  ;;  %v2546_v16 = vmul.f32 %v2487_v40, %v2336_v3  ;;  %v1897_v52 = vpack.i.bf16 %v973_v11, %v970_v7  ;;  %v918_v11 = vmul.f32 %v2388_v36, %v2380_v30 }
 0x570   : > { %v1001_v39 = vmul.f32 %v2451_v55, %v2348_v9 }
 0x571   : > { %v1024_v24 = vpop.permute.xlu1 %1023 }
 0x572   : > { %v2477_v34 = vsel %vm713_vm3, %v1024_v24, %v2449_v57  ;;  %v2512_v46 = vmul.f32 %v1024_v24, %v2348_v9  ;;  %v2515_v48 = vmul.f32 %v1024_v24, %v2339_v4  ;;  %v2533_v8 = vmul.f32 %v1024_v24, %v2369_v25 }
 0x573   : > { %1923 = vrot.lane.b32.xlu0 %v1922_v20, %s2129_s27  ;;  %1883 = vrot.lane.b32.xlu1 %v1882_v19, %s2129_s27  ;;  %v2493_v41 = vmul.f32 %v2477_v34, %v2333_v2  ;;  %v2501_v43 = vmul.f32 %v2477_v34, %v2351_v12  ;;  %v2536_v10 = vmul.f32 %v1024_v24, %v2380_v30  ;;  %v2552_v19 = vpop.permute.xlu0 %1086 }
 0x574   : > { %2922 = vst [vmem:[#allocation3_spill] sm:$0xff] %v2552_v19  ;;  %v977_v24 = vmul.f32 %v2428_v63, %v2372_v26  ;;  %v2600_v7 = vmul.f32 %v2552_v19, %v2354_v13  ;;  %v2628_v33 = vmul.f32 %v2552_v19, %v2421_v56 }
 0x575   : > { %v1054_v50 = vpop.permute.xlu1 %1053 }
 0x576   : > { %v2522_v62 = vsel %vm1057_vm9, %v1054_v50, %v2487_v40  ;;  %v2578_v61 = vmul.f32 %v1054_v50, %v2348_v9  ;;  %v2581_v28 = vmul.f32 %v1054_v50, %v2339_v4  ;;  %v2584_v21 = vmul.f32 %v1054_v50, %v2369_v25 }
 0x577   : > { %1928 = vrot.lane.b32.xlu0 %v1927_v51, %s2130_s28  ;;  %1888 = vrot.lane.b32.xlu1 %v1887_v53, %s2130_s28  ;;  %v2542_v15 = vmul.f32 %v2522_v62, %v2333_v2  ;;  %v2550_v18 = vmul.f32 %v2522_v62, %v2351_v12  ;;  %v1962_v51 = vpack.i.bf16 %v2465_v22, %v2505_v59 }
 0x578   : > { %v2587_v38 = vmul.f32 %v1054_v50, %v2380_v30  ;;  %v2592_v22 = vsel %vm996_vm8, %v2451_v55, %v2410_v49  ;;  %v1937_v59 = vpack.i.bf16 %v978_v60, %v977_v24  ;;  %v2612_v24 = vmul.f32 %v2552_v19, %v2336_v3 }
 0x579   : > { %v1085_v20 = vpop.permute.xlu1 %1084  ;;  %v915_v60 = vmul.f32 %v2388_v36, %v2369_v25  ;;  %v1002_v6 = vmul.f32 %v2592_v22, %v2333_v2  ;;  %v1003_v36 = vmul.f32 %v2410_v49, %v2336_v3 }
 0x57a   : > { %v2563_v32 = vsel %vm1088_vm10, %v1085_v20, %v2552_v19  ;;  %v2641_v5 = vmul.f32 %v1085_v20, %v2369_v25  ;;  %v2644_v53 = vmul.f32 %v1085_v20, %v2380_v30 }
 0x57b   : > { %2923 = vst [vmem:[#allocation4_spill] sm:$0xff] %v2563_v32  ;;  %1933 = vrot.lane.b32.xlu0 %v1932_v17, %s2131_s0  ;;  %1893 = vrot.lane.b32.xlu1 %v1892_v0, %s2131_s0  ;;  %v2596_v0 = vmul.f32 %v2563_v32, %v2351_v12  ;;  %v2608_v17 = vmul.f32 %v2563_v32, %v2333_v2 }
 0x57c   : > { %v2622_v50 = vmul.f32 %v2563_v32, %v2372_v26  ;;  %v949_v32 = vmul.f32 %v2402_v44, %v2380_v30  ;;  %v1947_v19 = vpack.i.bf16 %v918_v11, %v915_v60  ;;  %v976_v2 = vmul.f32 %v2423_v58, %v2369_v25 }
 0x57d   : > { %v1008_v60 = vmul.f32 %v2592_v22, %v2372_v26 }
 0x57f   : > { %1938 = vrot.lane.b32.xlu0 %v1937_v59, %s2132_s9  ;;  %1898 = vrot.lane.b32.xlu1 %v1897_v52, %s2132_s9  ;;  %v2631_v59 = vmul.f32 %v1085_v20, %v2348_v9  ;;  %v2634_v52 = vmul.f32 %v1085_v20, %v2339_v4  ;;  %v946_v20 = vmul.f32 %v2402_v44, %v2369_v25 }
 0x580   : > { %v979_v44 = vmul.f32 %v2423_v58, %v2380_v30  ;;  %v1006_v9 = vmul.f32 %v2410_v49, %v2354_v13  ;;  %v1010_v13 = vmul.f32 %v2451_v55, %v2380_v30  ;;  %v1011_v30 = vmul.f32 %v2592_v22, %v2377_v29 }
 0x581   : > { %2924 = vst [vmem:[#allocation5_spill] sm:$0xff] %v2631_v59  ;;  %v1967_v59 = vpack.i.bf16 %v1003_v36, %v1002_v6  ;;  %v1952_v3 = vpack.i.bf16 %v949_v32, %v946_v20  ;;  %v1004_v6 = vmul.f32 %v2451_v55, %v2339_v4  ;;  %v950_v32 = vmul.f32 %v2406_v47, %v2377_v29 }
 0x582   : > { %v951_v4 = vmul.f32 %v2374_v27, %v2447_v14  ;;  %v980_v27 = vmul.f32 %v2428_v63, %v2377_v29  ;;  %v2925_v36 = vpack.i.bf16 %v2497_v42, %v2493_v41  ;;  %v2926_v63 = vpack.i.bf16 %v2509_v45, %v2501_v43 }
 0x583   : > { %1943 = vrot.lane.b32.xlu0 %v1942_v37, %s2129_s27  ;;  %1963 = vrot.lane.b32.xlu1 %v1962_v51, %s2129_s27  ;;  %v920_v37 = vmul.f32 %v2366_v23, %v2447_v14  ;;  %v1957_v23 = vpack.i.bf16 %v979_v44, %v976_v2  ;;  %v981_v2 = vmul.f32 %v2386_v35, %v2447_v14 }
 0x584   : > { %v1997_v11 = vpack.i.bf16 %v951_v4, %v950_v32  ;;  %v1039_v35 = vmul.f32 %v2449_v57, %v2421_v56  ;;  %v1012_v41 = vmul.f32 %v2410_v49, %v2447_v14  ;;  %v2928_v43 = vpack.i.bf16 %v2536_v10, %v2533_v8 }
 0x585   : > { %v1977_v51 = vpack.i.bf16 %v920_v37, %v919_v1  ;;  %v1005_v1 = vmul.f32 %v2592_v22, %v2351_v12  ;;  %v1009_v12 = vmul.f32 %v2410_v49, %v2421_v56  ;;  %v2012_v37 = vpack.i.bf16 %v981_v2, %v980_v27 }
 0x586   : > { %v1041_v22 = vmul.f32 %v2477_v34, %v2377_v29  ;;  %v2929_v45 = vpack.i.bf16 %v2546_v16, %v2542_v15  ;;  %v1042_v49 = vmul.f32 %v2449_v57, %v2447_v14  ;;  %v1072_v10 = vmul.f32 %v2522_v62, %v2377_v29 }
 0x587   : > { %1948 = vrot.lane.b32.xlu0 %v1947_v19, %s2130_s28  ;;  %1968 = vrot.lane.b32.xlu1 %v1967_v59, %s2133_s10  ;;  %v1982_v19 = vpack.i.bf16 %v1004_v6, %v1001_v39  ;;  %v1972_v58 = vpack.i.bf16 %v1006_v9, %v1005_v1  ;;  %v1987_v47 = vpack.i.bf16 %v1009_v12, %v1008_v60  ;;  %v2136_v16 = vmov 1983009808   ;;  %v2935_v39 = vld [vmem:[#allocation4_spill] sm:$0xff] }
 0x588   : > { %v1007_v59 = vmul.f32 %v2451_v55, %v2369_v25  ;;  %v1038_v25 = vmul.f32 %v2477_v34, %v2372_v26  ;;  %v2927_v55 = vpack.i.bf16 %v2515_v48, %v2512_v46  ;;  %v2047_v46 = vpack.i.bf16 %v1042_v49, %v1041_v22 }
 0x589   : > { %v1069_v48 = vmul.f32 %v2522_v62, %v2372_v26  ;;  %v1070_v34 = vmul.f32 %v2487_v40, %v2421_v56  ;;  %v2931_v57 = vpack.i.bf16 %v2581_v28, %v2578_v61  ;;  %v1073_v26 = vmul.f32 %v2487_v40, %v2447_v14  ;;  %v1565_v56 = vld [vmem:[%s2913_s6] sm:$0x3f] }
 0x58a   : > { %v1992_v20 = vpack.i.bf16 %v1010_v13, %v1007_v59  ;;  %v2022_v42 = vpack.i.bf16 %v1039_v35, %v1038_v25  ;;  %v1573_v62 = vcombine.high %v1565_v56, %v1565_v56  ;;  %v2933_v40 = vpack.i.bf16 %v2600_v7, %v2596_v0  ;;  %v2937_v0 = vld [vmem:[#allocation5_spill] sm:$0xff] }
 0x58b   : > { %1953 = vrot.lane.b32.xlu0 %v1952_v3, %s2131_s0  ;;  %1978 = vrot.lane.b32.xlu1 %v1977_v51, %s2130_s28  ;;  %v2032_v3 = vpack.i.bf16 %v1012_v41, %v1011_v30  ;;  %v2930_v51 = vpack.i.bf16 %v2560_v31, %v2550_v18  ;;  %v2057_v8 = vpack.i.bf16 %v1070_v34, %v1069_v48  ;;  %v1575_v18 = vunpack.c.l.s4 %v2136_v16 }
 0x58c   : > { %v2067_v15 = vpack.i.bf16 %v1073_v26, %v1072_v10  ;;  %v2932_v31 = vpack.i.bf16 %v2587_v38, %v2584_v21  ;;  %v2934_v61 = vpack.i.bf16 %v2612_v24, %v2608_v17  ;;  %v1103_v6 = vmul.f32 %v2935_v39, %v2377_v29  ;;  %v2939_v17 = vld [vmem:[#allocation3_spill] sm:$0xff] }
 0x58d   : > { %v1576_v44 = vunpack.c.0.s8 %v1575_v18  ;;  %v2938_v7 = vpack.i.bf16 %v2634_v52, %v2937_v0  ;;  %v1104_v24 = vmul.f32 %v2939_v17, %v2447_v14  ;;  %v2940_v1 = vpack.i.bf16 %v2644_v53, %v2641_v5  ;;  %v1566_v29 = vld [vmem:[%s2914_s7] sm:$0xf] }
 0x58f   : > { %1958 = vrot.lane.b32.xlu0 %v1957_v23, %s2132_s9  ;;  %1983 = vrot.lane.b32.xlu1 %v1982_v19, %s2133_s10  ;;  %v1579_v28 = vsub.s32 %v1576_v44, %v2254_v54  ;;  %v2936_v54 = vpack.i.bf16 %v2628_v33, %v2622_v50  ;;  %v2092_v19 = vpack.i.bf16 %v1104_v24, %v1103_v6 }
 0x591   : > { %v2758_v21 = vrot.slane %v1565_v56, %v1579_v28  ;;  %v2760_v38 = vrot.slane %v1573_v62, %v1579_v28 }
 0x593   : > { %1973 = vrot.lane.b32.xlu0 %v1972_v58, %s2133_s10  ;;  %1998 = vrot.lane.b32.xlu1 %v1997_v11, %s2131_s0  ;;  %v1588_v23 = vcombine.high %v2758_v21, %v2758_v21 }
 0x595   : > { %1626 = vmatprep.mubr.bf16.mxu1 %v1588_v23 }
 0x597   : > { %1988 = vrot.lane.b32.xlu0 %v1987_v47, %s2133_s10  ;;  %2003 = vrot.lane.b32.xlu1 %v2925_v36, %s2134_s11 }
 0x59b   : > { %1993 = vrot.lane.b32.xlu0 %v1992_v20, %s2133_s10  ;;  %2013 = vrot.lane.b32.xlu1 %v2012_v37, %s2132_s9 }
 0x59f   : > { %2008 = vrot.lane.b32.xlu0 %v2926_v63, %s2134_s11  ;;  %2018 = vrot.lane.b32.xlu1 %v2927_v55, %s2134_s11 }
 0x5a3   : > { %2023 = vrot.lane.b32.xlu0 %v2022_v42, %s2134_s11  ;;  %2033 = vrot.lane.b32.xlu1 %v2032_v3, %s2133_s10 }
 0x5a7   : > { %2028 = vrot.lane.b32.xlu0 %v2928_v43, %s2134_s11  ;;  %2038 = vrot.lane.b32.xlu1 %v2929_v45, %s2135_s12 }
 0x5ab   : > { %2043 = vrot.lane.b32.xlu0 %v2930_v51, %s2135_s12  ;;  %2048 = vrot.lane.b32.xlu1 %v2047_v46, %s2134_s11 }
 0x5af   : > { %2058 = vrot.lane.b32.xlu0 %v2057_v8, %s2135_s12  ;;  %2053 = vrot.lane.b32.xlu1 %v2931_v57, %s2135_s12 }
 0x5b3   : > { %2063 = vrot.lane.b32.xlu0 %v2932_v31, %s2135_s12  ;;  %2068 = vrot.lane.b32.xlu1 %v2067_v15, %s2135_s12 }
 0x5b7   : > { %2078 = vrot.lane.b32.xlu0 %v2933_v40, %s2137_s15  ;;  %2073 = vrot.lane.b32.xlu1 %v2934_v61, %s2137_s15 }
 0x5bb   : > { %2088 = vrot.lane.b32.xlu0 %v2936_v54, %s2137_s15  ;;  %2083 = vrot.lane.b32.xlu1 %v2938_v7, %s2137_s15 }
 0x5bf   : > { %2098 = vrot.lane.b32.xlu0 %v2940_v1, %s2137_s15  ;;  %2093 = vrot.lane.b32.xlu1 %v2092_v19, %s2137_s15 }
 0x5c3   : > { %1569 = vperm.xlu1 %2102, %v1566_v29  }
 0x5c5   : > { %v1864_v33 = vpop.permute.xlu1 %1863 }
 0x5c6   : > { %v1866_v50 = vunpack.i.h.bf16 %v1864_v33  ;;  %v1865_v32 = vunpack.i.l.bf16 %v1864_v33 }
 0x5c8   : > { %v1143_v14 = vsel %vm1141_vm11, %v1865_v32, %v1866_v50 }
 0x5c9   : > { %v1904_v52 = vpop.permute.xlu0 %1903 }
 0x5ca   : > { %v1906_v9 = vunpack.i.h.bf16 %v1904_v52  ;;  %v1905_v4 = vunpack.i.l.bf16 %v1904_v52 }
 0x5cc   : > { %v1145_v58 = vsel %vm1141_vm11, %v1905_v4, %v1906_v9 }
 0x5cd   : > { %v1534_v11 = vpack.c.bf16 %v1145_v58, %v1143_v14 }
 0x5cf   : > { %1598 = vmatprep.subr.bf16.mxu1 %v1534_v11 }
 0x5d9   : > { %v1869_v5 = vpop.permute.xlu1 %1868  ;;  %v1909_v53 = vpop.permute.xlu0 %1908 }
 0x5da   : > { %v1871_v3 = vunpack.i.h.bf16 %v1869_v5  ;;  %v1870_v22 = vunpack.i.l.bf16 %v1869_v5  ;;  %v1911_v43 = vunpack.i.h.bf16 %v1909_v53  ;;  %v1910_v45 = vunpack.i.l.bf16 %v1909_v53 }
 0x5dc   : > { %v1196_v16 = vsel %vm1194_vm12, %v1870_v22, %v1871_v3  ;;  %v1198_v18 = vsel %vm1194_vm12, %v1910_v45, %v1911_v43 }
 0x5dd   : > { %v2782_v60 = vpop.permute.xlu1 %1873  ;;  %v2784_v12 = vpop.permute.xlu0 %1913  ;;  %v1538_v6 = vpack.c.bf16 %v1198_v18, %v1196_v16 }
 0x5de   : > { %v1876_v0 = vunpack.i.h.bf16 %v2782_v60  ;;  %v1875_v7 = vunpack.i.l.bf16 %v2782_v60  ;;  %v1916_v17 = vunpack.i.h.bf16 %v2784_v12  ;;  %v1915_v24 = vunpack.i.l.bf16 %v2784_v12 }
 0x5e0   : > { %v1249_v11 = vsel %vm1247_vm13, %v1875_v7, %v1876_v0  ;;  %v1251_v5 = vsel %vm1247_vm13, %v1915_v24, %v1916_v17 }
 0x5e1   : > { %v2786_v47 = vpop.permute.xlu1 %1878  ;;  %v2788_v59 = vpop.permute.xlu0 %1918 }
 0x5e2   : > { %v1921_v3 = vunpack.i.h.bf16 %v2788_v59 }
 0x5e5   : > { %v1884_v13 = vpop.permute.xlu1 %1883  ;;  %v1924_v27 = vpop.permute.xlu0 %1923 }
 0x5e6   : > { %v1886_v36 = vunpack.i.h.bf16 %v1884_v13  ;;  %v1885_v2 = vunpack.i.l.bf16 %v1884_v13  ;;  %v1926_v49 = vunpack.i.h.bf16 %v1924_v27  ;;  %v1925_v46 = vunpack.i.l.bf16 %v1924_v27 }
 0x5e8   : > { %v1142_v20 = vsel %vm1141_vm11, %v1885_v2, %v1865_v32  ;;  %v1144_v37 = vsel %vm1141_vm11, %v1886_v36, %v1905_v4  ;;  %v1147_v31 = vsel %vm1141_vm11, %v1925_v46, %v1926_v49 }
 0x5e9   : > { %v1889_v25 = vpop.permute.xlu1 %1888  ;;  %v1929_v30 = vpop.permute.xlu0 %1928  ;;  %v1533_v63 = vpack.c.bf16 %v1144_v37, %v1142_v20  ;;  %v1542_v37 = vpack.c.bf16 %v1251_v5, %v1249_v11 }
 0x5ea   : > { %v1891_v48 = vunpack.i.h.bf16 %v1889_v25  ;;  %v1890_v51 = vunpack.i.l.bf16 %v1889_v25  ;;  %v1931_v19 = vunpack.i.h.bf16 %v1929_v30  ;;  %v1930_v1 = vunpack.i.l.bf16 %v1929_v30 }
 0x5eb   : > { %1599 = vmatpush1.bf16.msra.mxu1 %v1533_v63  ;;  %v1881_v63 = vunpack.i.h.bf16 %v2786_v47 }
 0x5ec   : > { %v1195_v23 = vsel %vm1194_vm12, %v1890_v51, %v1870_v22  ;;  %v1197_v54 = vsel %vm1194_vm12, %v1891_v48, %v1910_v45  ;;  %v1200_v53 = vsel %vm1194_vm12, %v1930_v1, %v1931_v19  ;;  %v1920_v22 = vunpack.i.l.bf16 %v2788_v59 }
 0x5ed   : > { %v2792_v55 = vpop.permute.xlu1 %1893  ;;  %v2794_v35 = vpop.permute.xlu0 %1933  ;;  %v1537_v52 = vpack.c.bf16 %v1197_v54, %v1195_v23 }
 0x5ee   : > { %v1896_v33 = vunpack.i.h.bf16 %v2792_v55  ;;  %v1895_v9 = vunpack.i.l.bf16 %v2792_v55  ;;  %v1880_v55 = vunpack.i.l.bf16 %v2786_v47  ;;  %v1936_v43 = vunpack.i.h.bf16 %v2794_v35 }
 0x5ef   : > { %v1935_v45 = vunpack.i.l.bf16 %v2794_v35 }
 0x5f0   : > { %v1248_v25 = vsel %vm1247_vm13, %v1895_v9, %v1875_v7  ;;  %v1250_v30 = vsel %vm1247_vm13, %v1896_v33, %v1915_v24  ;;  %v1302_v59 = vsel %vm1300_vm14, %v1880_v55, %v1881_v63 }
 0x5f1   : > { %v2796_v41 = vpop.permute.xlu1 %1898  ;;  %v2798_v42 = vpop.permute.xlu0 %1938  ;;  %v1253_v35 = vsel %vm1247_vm13, %v1935_v45, %v1936_v43 }
 0x5f2   : > { %v1900_v47 = vunpack.i.l.bf16 %v2796_v41 }
 0x5f5   : > { %v1964_v34 = vpop.permute.xlu1 %1963  ;;  %v1944_v8 = vpop.permute.xlu0 %1943 }
 0x5f6   : > { %v1966_v10 = vunpack.i.h.bf16 %v1964_v34  ;;  %v1965_v57 = vunpack.i.l.bf16 %v1964_v34  ;;  %v1946_v26 = vunpack.i.h.bf16 %v1944_v8  ;;  %v1945_v15 = vunpack.i.l.bf16 %v1944_v8 }
 0x5f7   : > { %v1541_v34 = vpack.c.bf16 %v1250_v30, %v1248_v25 }
 0x5f8   : > { %v1149_v56 = vsel %vm1141_vm11, %v1965_v57, %v1966_v10  ;;  %v1146_v62 = vsel %vm1141_vm11, %v1945_v15, %v1925_v46  ;;  %v1148_v44 = vsel %vm1141_vm11, %v1946_v26, %v1965_v57  ;;  %v1901_v46 = vunpack.i.h.bf16 %v2796_v41 }
 0x5f9   : > { %v2806_v28 = vpop.permute.xlu1 %1968  ;;  %v1949_v40 = vpop.permute.xlu0 %1948  ;;  %v1536_v61 = vpack.c.bf16 %v1149_v56, %v1147_v31  ;;  %v1535_v39 = vpack.c.bf16 %v1148_v44, %v1146_v62  ;;  %v1304_v26 = vsel %vm1300_vm14, %v1920_v22, %v1921_v3  ;;  %v1301_v44 = vsel %vm1300_vm14, %v1900_v47, %v1880_v55 }
 0x5fa   : > { %v1950_v29 = vunpack.i.l.bf16 %v1949_v40  ;;  %v1951_v4 = vunpack.i.h.bf16 %v1949_v40  ;;  %v1303_v40 = vsel %vm1300_vm14, %v1901_v46, %v1920_v22  ;;  %v1971_v7 = vunpack.i.h.bf16 %v2806_v28 }
 0x5fb   : > { %1600 = vmatprep.subr.bf16.mxu1 %v1536_v61  ;;  %v1941_v61 = vunpack.i.h.bf16 %v2798_v42  ;;  %v1545_v19 = vpack.c.bf16 %v1303_v40, %v1301_v44 }
 0x5fc   : > { %1601 = vmatpush1.bf16.msra.mxu1 %v1535_v39  ;;  %v1199_v12 = vsel %vm1194_vm12, %v1950_v29, %v1930_v1  ;;  %v1940_v39 = vunpack.i.l.bf16 %v2798_v42  ;;  %v1970_v1 = vunpack.i.l.bf16 %v2806_v28 }
 0x5fd   : > { %v1979_v50 = vpop.permute.xlu1 %1978  ;;  %v1954_v32 = vpop.permute.xlu0 %1953  ;;  %1602 = vmatprep.subr.bf16.mxu1 %v1538_v6  ;;  %v1546_v6 = vpack.c.bf16 %v1304_v26, %v1302_v59 }
 0x5fe   : > { %v1981_v14 = vunpack.i.h.bf16 %v1979_v50  ;;  %v1980_v58 = vunpack.i.l.bf16 %v1979_v50  ;;  %v1955_v49 = vunpack.i.l.bf16 %v1954_v32  ;;  %v1956_v8 = vunpack.i.h.bf16 %v1954_v32 }
 0x600   : > { %1603 = vmatpush1.bf16.msra.mxu1 %v1537_v52  ;;  %v1202_v60 = vsel %vm1194_vm12, %v1980_v58, %v1981_v14  ;;  %v1201_v13 = vsel %vm1194_vm12, %v1951_v4, %v1980_v58  ;;  %v1252_v16 = vsel %vm1247_vm13, %v1955_v49, %v1935_v45  ;;  %v1306_v52 = vsel %vm1300_vm14, %v1940_v39, %v1941_v61 }
 0x601   : > { %v2822_v27 = vpop.permute.xlu1 %1983  ;;  %v2824_v36 = vpop.permute.xlu0 %1958  ;;  %v1540_v2 = vpack.c.bf16 %v1202_v60, %v1200_v53  ;;  %v1539_v20 = vpack.c.bf16 %v1201_v13, %v1199_v12  ;;  %v1355_v60 = vsel %vm1353_vm15, %v1970_v1, %v1971_v7 }
 0x602   : > { %v1960_v23 = vunpack.i.l.bf16 %v2824_v36  ;;  %v1961_v29 = vunpack.i.h.bf16 %v2824_v36  ;;  %v1986_v42 = vunpack.i.h.bf16 %v2822_v27  ;;  %v1985_v32 = vunpack.i.l.bf16 %v2822_v27 }
 0x603   : > { %1604 = vmatprep.subr.bf16.mxu1 %v1540_v2 }
 0x604   : > { %1605 = vmatpush1.bf16.msra.mxu1 %v1539_v20  ;;  %v1305_v4 = vsel %vm1300_vm14, %v1960_v23, %v1940_v39  ;;  %v1354_v25 = vsel %vm1353_vm15, %v1985_v32, %v1970_v1 }
 0x605   : > { %v1999_v48 = vpop.permute.xlu1 %1998  ;;  %v1974_v51 = vpop.permute.xlu0 %1973  ;;  %1606 = vmatprep.subr.bf16.mxu1 %v1542_v37 }
 0x606   : > { %v2001_v10 = vunpack.i.h.bf16 %v1999_v48  ;;  %v2000_v57 = vunpack.i.l.bf16 %v1999_v48  ;;  %v1976_v54 = vunpack.i.h.bf16 %v1974_v51  ;;  %v1975_v0 = vunpack.i.l.bf16 %v1974_v51 }
 0x608   : > { %1607 = vmatpush1.bf16.msra.mxu1 %v1541_v34  ;;  %v1255_v15 = vsel %vm1247_vm13, %v2000_v57, %v2001_v10  ;;  %v1254_v18 = vsel %vm1247_vm13, %v1956_v8, %v2000_v57  ;;  %v1357_v28 = vsel %vm1353_vm15, %v1975_v0, %v1976_v54  ;;  %v1356_v12 = vsel %vm1353_vm15, %v1986_v42, %v1975_v0 }
 0x609   : > { %v2842_v31 = vpop.permute.xlu1 %2003  ;;  %v2844_v56 = vpop.permute.xlu0 %1988  ;;  %v1544_v41 = vpack.c.bf16 %v1255_v15, %v1253_v35  ;;  %v1543_v62 = vpack.c.bf16 %v1254_v18, %v1252_v16  ;;  %v1550_v36 = vpack.c.bf16 %v1357_v28, %v1355_v60  ;;  %v1549_v43 = vpack.c.bf16 %v1356_v12, %v1354_v25 }
 0x60a   : > { %v1991_v13 = vunpack.i.h.bf16 %v2844_v56  ;;  %v1990_v27 = vunpack.i.l.bf16 %v2844_v56  ;;  %v2006_v30 = vunpack.i.h.bf16 %v2842_v31  ;;  %v2005_v63 = vunpack.i.l.bf16 %v2842_v31 }
 0x60b   : > { %1608 = vmatprep.subr.bf16.mxu1 %v1544_v41 }
 0x60c   : > { %1609 = vmatpush1.bf16.msra.mxu1 %v1543_v62  ;;  %v1359_v51 = vsel %vm1353_vm15, %v1990_v27, %v1991_v13  ;;  %v1408_v15 = vsel %vm1406_vm0, %v2005_v63, %v2006_v30 }
 0x60d   : > { %v2014_v17 = vpop.permute.xlu1 %2013  ;;  %v1994_v24 = vpop.permute.xlu0 %1993  ;;  %1610 = vmatprep.subr.bf16.mxu1 %v1546_v6 }
 0x60e   : > { %v2016_v33 = vunpack.i.h.bf16 %v2014_v17  ;;  %v2015_v50 = vunpack.i.l.bf16 %v2014_v17  ;;  %v1995_v2 = vunpack.i.l.bf16 %v1994_v24  ;;  %v1996_v55 = vunpack.i.h.bf16 %v1994_v24 }
 0x610   : > { %1611 = vmatpush1.bf16.msra.mxu1 %v1545_v19  ;;  %v1308_v9 = vsel %vm1300_vm14, %v2015_v50, %v2016_v33  ;;  %v1307_v14 = vsel %vm1300_vm14, %v1961_v29, %v2015_v50  ;;  %v1358_v47 = vsel %vm1353_vm15, %v1995_v2, %v1990_v27 }
 0x611   : > { %v2019_v58 = vpop.permute.xlu1 %2018  ;;  %v2009_v11 = vpop.permute.xlu0 %2008  ;;  %v1548_v5 = vpack.c.bf16 %v1308_v9, %v1306_v52  ;;  %v1547_v53 = vpack.c.bf16 %v1307_v14, %v1305_v4 }
 0x612   : > { %v2011_v20 = vunpack.i.h.bf16 %v2009_v11  ;;  %v2010_v37 = vunpack.i.l.bf16 %v2009_v11  ;;  %v2021_v45 = vunpack.i.h.bf16 %v2019_v58  ;;  %v2020_v49 = vunpack.i.l.bf16 %v2019_v58 }
 0x613   : > { %1612 = vmatprep.subr.bf16.mxu1 %v1548_v5 }
 0x614   : > { %1613 = vmatpush1.bf16.msra.mxu1 %v1547_v53  ;;  %v1410_v10 = vsel %vm1406_vm0, %v2010_v37, %v2011_v20  ;;  %v1407_v16 = vsel %vm1406_vm0, %v2020_v49, %v2005_v63  ;;  %v1409_v18 = vsel %vm1406_vm0, %v2021_v45, %v2010_v37 }
 0x615   : > { %v2034_v3 = vpop.permute.xlu1 %2033  ;;  %v2024_v22 = vpop.permute.xlu0 %2023  ;;  %1614 = vmatprep.subr.bf16.mxu1 %v1550_v36  ;;  %v1554_v41 = vpack.c.bf16 %v1410_v10, %v1408_v15  ;;  %v1553_v23 = vpack.c.bf16 %v1409_v18, %v1407_v16  ;;  %v2941_v18 = vmov 0  }
 0x616   : > { %v2036_v46 = vunpack.i.h.bf16 %v2034_v3  ;;  %v2035_v48 = vunpack.i.l.bf16 %v2034_v3  ;;  %v2026_v31 = vunpack.i.h.bf16 %v2024_v22  ;;  %v2025_v56 = vunpack.i.l.bf16 %v2024_v22 }
 0x618   : > { %1615 = vmatpush1.bf16.msra.mxu1 %v1549_v43  ;;  %v1361_v34 = vsel %vm1353_vm15, %v2035_v48, %v2036_v46  ;;  %v1360_v8 = vsel %vm1353_vm15, %v1996_v55, %v2035_v48  ;;  %v1412_v24 = vsel %vm1406_vm0, %v2025_v56, %v2026_v31 }
 0x619   : > { %v2039_v57 = vpop.permute.xlu1 %2038  ;;  %v2029_v59 = vpop.permute.xlu0 %2028  ;;  %v1552_v26 = vpack.c.bf16 %v1361_v34, %v1359_v51  ;;  %v1551_v35 = vpack.c.bf16 %v1360_v8, %v1358_v47 }
 0x61a   : > { %v2030_v62 = vunpack.i.l.bf16 %v2029_v59  ;;  %v2041_v44 = vunpack.i.h.bf16 %v2039_v57  ;;  %v2040_v40 = vunpack.i.l.bf16 %v2039_v57  ;;  %v2031_v61 = vunpack.i.h.bf16 %v2029_v59 }
 0x61b   : > { %1616 = vmatprep.subr.bf16.mxu1 %v1552_v26 }
 0x61c   : > { %1617 = vmatpush1.bf16.msra.mxu1 %v1551_v35  ;;  %v1411_v1 = vsel %vm1406_vm0, %v2030_v62, %v2025_v56  ;;  %v1461_v14 = vsel %vm1459_vm1, %v2040_v40, %v2041_v44 }
 0x61d   : > { %v2049_v39 = vpop.permute.xlu1 %2048  ;;  %v2044_v6 = vpop.permute.xlu0 %2043  ;;  %1618 = vmatprep.subr.bf16.mxu1 %v1554_v41 }
 0x61e   : > { %v2051_v54 = vunpack.i.h.bf16 %v2049_v39  ;;  %v2050_v0 = vunpack.i.l.bf16 %v2049_v39  ;;  %v2046_v7 = vunpack.i.h.bf16 %v2044_v6  ;;  %v2045_v17 = vunpack.i.l.bf16 %v2044_v6 }
 0x620   : > { %1619 = vmatpush1.bf16.msra.mxu1 %v1553_v23  ;;  %v1414_v19 = vsel %vm1406_vm0, %v2050_v0, %v2051_v54  ;;  %v1413_v29 = vsel %vm1406_vm0, %v2031_v61, %v2050_v0  ;;  %v1463_v33 = vsel %vm1459_vm1, %v2045_v17, %v2046_v7 }
 0x621   : > { %v2054_v50 = vpop.permute.xlu1 %2053  ;;  %v2059_v42 = vpop.permute.xlu0 %2058  ;;  %v1556_v32 = vpack.c.bf16 %v1414_v19, %v1412_v24  ;;  %v1555_v52 = vpack.c.bf16 %v1413_v29, %v1411_v1  ;;  %v1558_v28 = vpack.c.bf16 %v1463_v33, %v1461_v14 }
 0x622   : > { %v2056_v9 = vunpack.i.h.bf16 %v2054_v50  ;;  %v2055_v4 = vunpack.i.l.bf16 %v2054_v50  ;;  %v2061_v58 = vunpack.i.h.bf16 %v2059_v42  ;;  %v2060_v11 = vunpack.i.l.bf16 %v2059_v42 }
 0x623   : > { %1620 = vmatprep.subr.bf16.mxu1 %v1556_v32 }
 0x624   : > { %1621 = vmatpush1.bf16.msra.mxu1 %v1555_v52  ;;  %v1460_v5 = vsel %vm1459_vm1, %v2055_v4, %v2040_v40  ;;  %v1462_v53 = vsel %vm1459_vm1, %v2056_v9, %v2045_v17  ;;  %v1465_v37 = vsel %vm1459_vm1, %v2060_v11, %v2061_v58 }
 0x625   : > { %v2069_v60 = vpop.permute.xlu1 %2068  ;;  %v2064_v12 = vpop.permute.xlu0 %2063  ;;  %1622 = vmatprep.subr.bf16.mxu1 %v1558_v28  ;;  %v1557_v13 = vpack.c.bf16 %v1462_v53, %v1460_v5 }
 0x626   : > { %v2071_v27 = vunpack.i.h.bf16 %v2069_v60  ;;  %v2070_v36 = vunpack.i.l.bf16 %v2069_v60  ;;  %v2066_v2 = vunpack.i.h.bf16 %v2064_v12  ;;  %v2065_v20 = vunpack.i.l.bf16 %v2064_v12 }
 0x628   : > { %1623 = vmatpush1.bf16.msra.mxu1 %v1557_v13  ;;  %v1467_v25 = vsel %vm1459_vm1, %v2070_v36, %v2071_v27  ;;  %v1464_v30 = vsel %vm1459_vm1, %v2065_v20, %v2060_v11  ;;  %v1466_v63 = vsel %vm1459_vm1, %v2066_v2, %v2070_v36 }
 0x629   : > { %v2074_v55 = vpop.permute.xlu1 %2073  ;;  %v2079_v3 = vpop.permute.xlu0 %2078  ;;  %v1560_v22 = vpack.c.bf16 %v1467_v25, %v1465_v37  ;;  %v1559_v43 = vpack.c.bf16 %v1466_v63, %v1464_v30 }
 0x62a   : > { %v2076_v45 = vunpack.i.h.bf16 %v2074_v55  ;;  %v2075_v49 = vunpack.i.l.bf16 %v2074_v55  ;;  %v2081_v46 = vunpack.i.h.bf16 %v2079_v3  ;;  %v2080_v48 = vunpack.i.l.bf16 %v2079_v3 }
 0x62b   : > { %1624 = vmatprep.subr.bf16.mxu1 %v1560_v22 }
 0x62c   : > { %1625 = vmatpush1.bf16.msra.mxu1 %v1559_v43  ;;  %v1514_v51 = vsel %vm1512_vm2, %v2075_v49, %v2076_v45  ;;  %v1516_v34 = vsel %vm1512_vm2, %v2080_v48, %v2081_v46 }
 0x62d   : > { %v2084_v47 = vpop.permute.xlu1 %2083  ;;  %v2089_v8 = vpop.permute.xlu0 %2088  ;;  %v1562_v10 = vpack.c.bf16 %v1516_v34, %v1514_v51 }
 0x62e   : > { %v2086_v57 = vunpack.i.h.bf16 %v2084_v47  ;;  %v2085_v59 = vunpack.i.l.bf16 %v2084_v47  ;;  %v2091_v15 = vunpack.i.h.bf16 %v2089_v8  ;;  %v2090_v16 = vunpack.i.l.bf16 %v2089_v8 }
 0x62f   : > { %1627 = vmatmul.mubr.bf16.vlgmr.msra.gmra.mrb[0].mxu1 %v2758_v21  ;;  %1635 = vmatprep.subr.bf16.mxu1 %v1562_v10 }
 0x630   : > { %v1513_v26 = vsel %vm1512_vm2, %v2085_v59, %v2075_v49  ;;  %v1515_v35 = vsel %vm1512_vm2, %v2086_v57, %v2080_v48  ;;  %1667 = vmatprep.mubr.bf16.mxu1 %v2941_v18  ;;  %v1518_v6 = vsel %vm1512_vm2, %v2090_v16, %v2091_v15 }
 0x631   : > { %v1561_v31 = vpack.c.bf16 %v1515_v35, %v1513_v26  ;;  %v2094_v56 = vpop.permute.xlu1 %2093  ;;  %v2099_v41 = vpop.permute.xlu0 %2098 }
 0x632   : > { %v2096_v62 = vunpack.i.h.bf16 %v2094_v56  ;;  %v2095_v44 = vunpack.i.l.bf16 %v2094_v56  ;;  %v2101_v40 = vunpack.i.h.bf16 %v2099_v41  ;;  %v2100_v61 = vunpack.i.l.bf16 %v2099_v41 }
 0x633   : > { %1636 = vmatpush1.bf16.msra.mxu1 %v1561_v31 }
 0x634   : > { %v1519_v21 = vsel %vm1512_vm2, %v2101_v40, %v2095_v44  ;;  %v1517_v39 = vsel %vm1512_vm2, %v2100_v61, %v2090_v16  ;;  %v1520_v23 = vsel %vm1512_vm2, %v2095_v44, %v2096_v62 }
 0x635   : > { %v1563_v54 = vpack.c.bf16 %v1519_v21, %v1517_v39  ;;  %v1564_v0 = vpack.c.bf16 %v1520_v23, %v1518_v6 }
 0x637   : > { %1637 = vmatprep.subr.bf16.mxu1 %v1564_v0 }
 0x638   : > { %1638 = vmatpush1.bf16.msra.mxu1 %v1563_v54 }
 0x63b   : > { %1772 = vmatmul.mubr.msk.bf16.vlgmr.msra.gmra.mrb[0].mxu1 %vm713_vm3, %v2760_v38 }
 0x642   : > { %v1570_v7 = vpop.permute.xlu1 %1569 }
 0x70e   : > { %v1669_v17 = vpop.f32.mrb[0].mxu1 }
 0x70f   : > { %v1815_v24 = vadd.f32 %v1669_v17, %v1570_v7  ;;  %v1671_v19 = vpop.f32.mrb[1].mxu1 }
 0x710   : > { %v1816_v1 = vadd.f32 %v1671_v19, %v1570_v7  ;;  %v1673_v29 = vpop.f32.mrb[2].mxu1 }
 0x711   : > { %v1674_v33 = vpop.f32.mrb[3].mxu1 }
 0x712   : > { %v1678_v50 = vcombine.low %v1815_v24, %v1816_v1 }
 0x714   : > { %1680 = vst [vmem:[%s326_s21] sm:$0xff] %v1678_v50 }
 0x715 PF: > { %s19_s29 = sadd.s32 1, %s2115_s29  }
 0x716   : > { %p16_p4 = scmp.ge.s32.totalorder %s19_s29, 4  }
 0x718   :  { %18 = sbr.rel (!%p16_p4) target bundleno = 2 (0x2), region = 85 }

</bundles_post_ra>
